<compile_context>
chip_gen: v6e
topology: v6e:2x2x1
jax: 0.10.0
libtpu: 0.0.40
codegen_flags: <defaults>
</compile_context>

<pallas_src>
import jax
import jax.numpy as jnp
from jax.experimental import pallas as pl
from jax.experimental.pallas import tpu as pltpu


_UNROLL_MAX_C_IN = 32          # fully unroll the contraction when C_in is small
_C_IN_CHUNK = 8                # sublane-aligned chunk size for the fori_loop path
_VMEM_TILE_BUDGET = 24 << 20   # double-buffered working-set budget for tile choice
_VMEM_LIMIT_CAP = 48 << 20     # explicit scoped-VMEM cap (safe on v5e/v6e/v7x)


def _per_feat_linear_kernel(x_ref, w_ref, b_ref, o_ref):
    """out[b, o, f] = sum_i x[b, i, f] * w[i, o, f] + bias[o, f]  (lane axis = f).

    x_ref: (B, C_in, Ft)   w_ref: (C_in, C_out, Ft)   b_ref: (C_out, Ft)
    o_ref: (B, C_out, Ft)
    """
    B, C_in, Ft = x_ref.shape
    C_out = w_ref.shape[1]
    f32 = jnp.float32

    def fma(acc, x_bi, w_io):
        # x_bi: (B, 1, Ft), w_io: (1, C_out, Ft) -> broadcast FMA on the VPU.
        # (A stride-0 replicated load of x over C_out would shift the broadcast
        #  to the idle vld slot; skipped here to keep lowering maximally robust.)
        return acc + x_bi.astype(f32) * w_io.astype(f32)

    acc = jnp.zeros((B, C_out, Ft), f32)

    if C_in <= _UNROLL_MAX_C_IN:
        # Small contraction: full static unroll. Every slice is a contiguous ref
        # load consumed immediately (no full-tile materialization, no value-level
        # sublane selects).
        for i in range(C_in):
            acc = fma(acc, x_ref[:, i:i + 1, :], w_ref[i:i + 1])
    else:
        # Large contraction: fori_loop over sublane-aligned chunks of 8
        # (effective unroll=8) bounds live ranges / vreg pressure.
        n_chunks = C_in // _C_IN_CHUNK

        def chunk_body(k, acc):
            i0 = pl.multiple_of(k * _C_IN_CHUNK, _C_IN_CHUNK)
            xc = x_ref[:, pl.ds(i0, _C_IN_CHUNK), :]       # (B, 8, Ft) aligned load
            for j in range(_C_IN_CHUNK):
                w_j = w_ref[pl.ds(i0 + j, 1)]              # (1, C_out, Ft) contiguous
                acc = fma(acc, xc[:, j:j + 1, :], w_j)
            return acc

        acc = jax.lax.fori_loop(0, n_chunks, chunk_body, acc)
        for i in range(n_chunks * _C_IN_CHUNK, C_in):      # static remainder
            acc = fma(acc, x_ref[:, i:i + 1, :], w_ref[i:i + 1])

    # Single full-tile store per grid step (one vst stream; unmasked when the
    # lane tile is a 128-multiple).
    o_ref[...] = (acc + b_ref[...][None].astype(f32)).astype(o_ref.dtype)


def _choose_f_tile(F, per_feat_bytes, vmem_budget=_VMEM_TILE_BUDGET):
    """Pick the feature (lane) tile from the VMEM budget."""
    if F <= 128:
        return F  # one sub-microsecond step; tiling cannot help at this size
    max_by_vmem = max(128, min(2048, (vmem_budget // per_feat_bytes) // 128 * 128))
    if F <= max_by_vmem:
        # Whole F fits comfortably. If it is big, split once so v7x's second
        # TensorCore gets a parallel grid step (harmless on 1-TC v5e/v6e).
        if F >= 1024 and (F // 2) % 128 == 0:
            return F // 2
        return F
    # Largest 128-multiple tile within budget, preferring a divisor of F so the
    # final block is not a padded / masked partial tile.
    for t in range(max_by_vmem, 127, -128):
        if F % t == 0:
            return t
    return max_by_vmem


def linear_layer_forward(x, weights, biases, *, f_tile=None, param_dtype=jnp.bfloat16):
    """x: [B, C_in, F] f32; weights: [F, C_out, C_in]; biases: [F, C_out].

    Returns [B, C_out, F] f32, matching PyTorch LinearLayer.forward.
    param_dtype=jnp.bfloat16 halves weight HBM traffic (f32 accumulate inside);
    pass jnp.float32 for exact PyTorch numerics.
    """
    B, C_in, F = x.shape
    Fw, C_out, C_in_w = weights.shape
    assert Fw == F and C_in_w == C_in

    # One-time, small parameter re-layout so F is the lane dim and each per-i
    # weight slice w[i] is a contiguous (C_out, F) (sublane, lane) tile.
    w_t = jnp.transpose(weights, (2, 1, 0))                 # (C_in, C_out, F)
    if param_dtype is not None:
        w_t = w_t.astype(param_dtype)
    b_t = jnp.transpose(biases, (1, 0)).astype(jnp.float32)  # (C_out, F), keep f32

    # Bytes per feature lane across all (double-buffered) input/output blocks.
    per_f = 2 * (B * C_in * x.dtype.itemsize
                 + C_in * C_out * w_t.dtype.itemsize
                 + C_out * b_t.dtype.itemsize
                 + B * C_out * 4)

    if f_tile is None:
        f_tile = _choose_f_tile(F, per_f)
    else:
        if f_tile != F and (f_tile % 128 != 0 or f_tile > F):
            raise ValueError(
                "f_tile must equal F or be a 128-multiple <= F "
                f"(got f_tile={f_tile}, F={F})")

    grid = (pl.cdiv(F, f_tile),)

    # Explicit scoped-VMEM limit: covers the chosen tiles with headroom, stays
    # below every chip's physical VMEM (incl. v7x's 64 MiB per TensorCore).
    vmem_limit = int(min(_VMEM_LIMIT_CAP,
                         max(8 << 20, per_f * f_tile * 5 // 4 + (2 << 20))))

    # NOTE: for F < 128 (e.g. tiny enc_in) the output store is lane-masked and
    # the whole problem is a single sub-microsecond grid step dominated by call
    # overhead — at that size fusing into surrounding JAX is just as good.
    # TODO(synk): if batch size grows (ops/byte > ~1.2 on v7x) this VPU-FMA
    # formulation becomes VALU-bound; switch the contraction to MXU dots then.
    out = pl.pallas_call(
        _per_feat_linear_kernel,
        out_shape=jax.ShapeDtypeStruct((B, C_out, F), jnp.float32),
        grid_spec=pltpu.PrefetchScalarGridSpec(
            num_scalar_prefetch=0,
            grid=grid,
            in_specs=[
                pl.BlockSpec((B, C_in, f_tile), lambda i: (0, 0, i)),
                pl.BlockSpec((C_in, C_out, f_tile), lambda i: (0, 0, i)),
                pl.BlockSpec((C_out, f_tile), lambda i: (0, i)),
            ],
            out_specs=pl.BlockSpec((B, C_out, f_tile), lambda i: (0, 0, i)),
        ),
        compiler_params=pltpu.CompilerParams(
            # Feature tiles are independent -> megacore-shardable on v7x.
            dimension_semantics=("parallel",),
            vmem_limit_bytes=vmem_limit,
        ),
    )(x, w_t, b_t)

    # TODO(synk): Model's RBF time embedding (sklego RepeatingBasisFunction
    # .fit_transform on host), the seq-last detrend/concat and the residual add
    # are host/JAX-side preprocessing around this kernel; only the per-feature
    # LinearLayer compute is kernelized here.
    return out


def init_params(key, in_channels, out_channels, num_feats):
    # Deterministic synthetic init (nn.Linear-style uniform bound).
    kw, kb = jax.random.split(key)
    bound = 1.0 / jnp.sqrt(jnp.float32(in_channels))
    weights = jax.random.uniform(
        kw, (num_feats, out_channels, in_channels),
        minval=-bound, maxval=bound, dtype=jnp.float32)
    biases = jax.random.uniform(
        kb, (num_feats, out_channels),
        minval=-bound, maxval=bound, dtype=jnp.float32)
    return weights, biases


if __name__ == "__main__":
    key = jax.random.PRNGKey(0)

    # --- Test 1: Model-implied small shapes (seq_len=8 -> C_in=24, pred_len=8,
    # enc_in=16, batch=2); f32 params = exact PyTorch semantics. ---
    B, C_in, C_out, F = 2, 24, 8, 16
    k1, k2, key = jax.random.split(key, 3)
    x = jax.random.normal(k1, (B, C_in, F), dtype=jnp.float32)
    weights, biases = init_params(k2, C_in, C_out, F)

    out = jax.block_until_ready(
        linear_layer_forward(x, weights, biases, param_dtype=jnp.float32))
    ref = jnp.einsum("bcf,foc->bof", x, weights,
                     precision=jax.lax.Precision.HIGHEST) + biases.T[None]
    assert out.shape == (B, C_out, F)
    assert jnp.allclose(out, ref, atol=1e-5, rtol=1e-5)

    # --- Test 2: production-like shapes exercising feature tiling (grid > 1),
    # the chunked fori_loop contraction (C_in > 32) and bf16 weight traffic. ---
    B, C_in, C_out, F = 4, 112, 96, 1024
    k1, k2, key = jax.random.split(key, 3)
    x = jax.random.normal(k1, (B, C_in, F), dtype=jnp.float32)
    weights, biases = init_params(k2, C_in, C_out, F)

    out = jax.block_until_ready(linear_layer_forward(x, weights, biases))
    w_q = weights.astype(jnp.bfloat16).astype(jnp.float32)  # same rounding as kernel
    ref = jnp.einsum("bcf,foc->bof", x, w_q,
                     precision=jax.lax.Precision.HIGHEST) + biases.T[None]
    assert out.shape == (B, C_out, F)
    assert jnp.allclose(out, ref, atol=1e-4, rtol=1e-4)

    print("KERNEL_OK")
</pallas_src>

<mosaic_0001>
module attributes {stable_mosaic.version = 11 : i64} {
  func.func @_per_feat_linear_kernel(%arg0: i32, %arg1: memref<2x24x16xf32, #tpu.memory_space<vmem>>, %arg2: memref<24x8x16xf32, #tpu.memory_space<vmem>>, %arg3: memref<8x16xf32, #tpu.memory_space<vmem>>, %arg4: memref<2x8x16xf32, #tpu.memory_space<vmem>>) attributes {dimension_semantics = [#tpu.dimension_semantics<parallel>], iteration_bounds = array<i64: 1>, scalar_prefetch = 0 : i64, scratch_operands = 0 : i64, tpu.core_type = #tpu.core_type<tc>, window_params = [{transform_indices = @transform_0, window_bounds = array<i64: 2, 24, 16>}, {transform_indices = @transform_1, window_bounds = array<i64: 24, 8, 16>}, {transform_indices = @transform_2, window_bounds = array<i64: 8, 16>}, {transform_indices = @transform_3, window_bounds = array<i64: 2, 8, 16>}]} {
    %cst = arith.constant 0.000000e+00 : f32
    %0 = vector.broadcast %cst : f32 to vector<2x8x16xf32>
    %c0 = arith.constant 0 : index
    %c0_0 = arith.constant 0 : index
    %c0_1 = arith.constant 0 : index
    %1 = vector.load %arg1[%c0, %c0_0, %c0_1] : memref<2x24x16xf32, #tpu.memory_space<vmem>>, vector<2x1x16xf32>
    %c0_2 = arith.constant 0 : index
    %c0_3 = arith.constant 0 : index
    %c0_4 = arith.constant 0 : index
    %2 = vector.load %arg2[%c0_2, %c0_3, %c0_4] : memref<24x8x16xf32, #tpu.memory_space<vmem>>, vector<1x8x16xf32>
    %3 = vector.broadcast %1 : vector<2x1x16xf32> to vector<2x8x16xf32>
    %4 = vector.broadcast %2 : vector<1x8x16xf32> to vector<2x8x16xf32>
    %5 = arith.mulf %3, %4 : vector<2x8x16xf32>
    %6 = arith.addf %0, %5 : vector<2x8x16xf32>
    %c0_5 = arith.constant 0 : index
    %c1 = arith.constant 1 : index
    %c0_6 = arith.constant 0 : index
    %7 = vector.load %arg1[%c0_5, %c1, %c0_6] : memref<2x24x16xf32, #tpu.memory_space<vmem>>, vector<2x1x16xf32>
    %c1_7 = arith.constant 1 : index
    %c0_8 = arith.constant 0 : index
    %c0_9 = arith.constant 0 : index
    %8 = vector.load %arg2[%c1_7, %c0_8, %c0_9] : memref<24x8x16xf32, #tpu.memory_space<vmem>>, vector<1x8x16xf32>
    %9 = vector.broadcast %7 : vector<2x1x16xf32> to vector<2x8x16xf32>
    %10 = vector.broadcast %8 : vector<1x8x16xf32> to vector<2x8x16xf32>
    %11 = arith.mulf %9, %10 : vector<2x8x16xf32>
    %12 = arith.addf %6, %11 : vector<2x8x16xf32>
    %c0_10 = arith.constant 0 : index
    %c2 = arith.constant 2 : index
    %c0_11 = arith.constant 0 : index
    %13 = vector.load %arg1[%c0_10, %c2, %c0_11] : memref<2x24x16xf32, #tpu.memory_space<vmem>>, vector<2x1x16xf32>
    %c2_12 = arith.constant 2 : index
    %c0_13 = arith.constant 0 : index
    %c0_14 = arith.constant 0 : index
    %14 = vector.load %arg2[%c2_12, %c0_13, %c0_14] : memref<24x8x16xf32, #tpu.memory_space<vmem>>, vector<1x8x16xf32>
    %15 = vector.broadcast %13 : vector<2x1x16xf32> to vector<2x8x16xf32>
    %16 = vector.broadcast %14 : vector<1x8x16xf32> to vector<2x8x16xf32>
    %17 = arith.mulf %15, %16 : vector<2x8x16xf32>
    %18 = arith.addf %12, %17 : vector<2x8x16xf32>
    %c0_15 = arith.constant 0 : index
    %c3 = arith.constant 3 : index
    %c0_16 = arith.constant 0 : index
    %19 = vector.load %arg1[%c0_15, %c3, %c0_16] : memref<2x24x16xf32, #tpu.memory_space<vmem>>, vector<2x1x16xf32>
    %c3_17 = arith.constant 3 : index
    %c0_18 = arith.constant 0 : index
    %c0_19 = arith.constant 0 : index
    %20 = vector.load %arg2[%c3_17, %c0_18, %c0_19] : memref<24x8x16xf32, #tpu.memory_space<vmem>>, vector<1x8x16xf32>
    %21 = vector.broadcast %19 : vector<2x1x16xf32> to vector<2x8x16xf32>
    %22 = vector.broadcast %20 : vector<1x8x16xf32> to vector<2x8x16xf32>
    %23 = arith.mulf %21, %22 : vector<2x8x16xf32>
    %24 = arith.addf %18, %23 : vector<2x8x16xf32>
    %c0_20 = arith.constant 0 : index
    %c4 = arith.constant 4 : index
    %c0_21 = arith.constant 0 : index
    %25 = vector.load %arg1[%c0_20, %c4, %c0_21] : memref<2x24x16xf32, #tpu.memory_space<vmem>>, vector<2x1x16xf32>
    %c4_22 = arith.constant 4 : index
    %c0_23 = arith.constant 0 : index
    %c0_24 = arith.constant 0 : index
    %26 = vector.load %arg2[%c4_22, %c0_23, %c0_24] : memref<24x8x16xf32, #tpu.memory_space<vmem>>, vector<1x8x16xf32>
    %27 = vector.broadcast %25 : vector<2x1x16xf32> to vector<2x8x16xf32>
    %28 = vector.broadcast %26 : vector<1x8x16xf32> to vector<2x8x16xf32>
    %29 = arith.mulf %27, %28 : vector<2x8x16xf32>
    %30 = arith.addf %24, %29 : vector<2x8x16xf32>
    %c0_25 = arith.constant 0 : index
    %c5 = arith.constant 5 : index
    %c0_26 = arith.constant 0 : index
    %31 = vector.load %arg1[%c0_25, %c5, %c0_26] : memref<2x24x16xf32, #tpu.memory_space<vmem>>, vector<2x1x16xf32>
    %c5_27 = arith.constant 5 : index
    %c0_28 = arith.constant 0 : index
    %c0_29 = arith.constant 0 : index
    %32 = vector.load %arg2[%c5_27, %c0_28, %c0_29] : memref<24x8x16xf32, #tpu.memory_space<vmem>>, vector<1x8x16xf32>
    %33 = vector.broadcast %31 : vector<2x1x16xf32> to vector<2x8x16xf32>
    %34 = vector.broadcast %32 : vector<1x8x16xf32> to vector<2x8x16xf32>
    %35 = arith.mulf %33, %34 : vector<2x8x16xf32>
    %36 = arith.addf %30, %35 : vector<2x8x16xf32>
    %c0_30 = arith.constant 0 : index
    %c6 = arith.constant 6 : index
    %c0_31 = arith.constant 0 : index
    %37 = vector.load %arg1[%c0_30, %c6, %c0_31] : memref<2x24x16xf32, #tpu.memory_space<vmem>>, vector<2x1x16xf32>
    %c6_32 = arith.constant 6 : index
    %c0_33 = arith.constant 0 : index
    %c0_34 = arith.constant 0 : index
    %38 = vector.load %arg2[%c6_32, %c0_33, %c0_34] : memref<24x8x16xf32, #tpu.memory_space<vmem>>, vector<1x8x16xf32>
    %39 = vector.broadcast %37 : vector<2x1x16xf32> to vector<2x8x16xf32>
    %40 = vector.broadcast %38 : vector<1x8x16xf32> to vector<2x8x16xf32>
    %41 = arith.mulf %39, %40 : vector<2x8x16xf32>
    %42 = arith.addf %36, %41 : vector<2x8x16xf32>
    %c0_35 = arith.constant 0 : index
    %c7 = arith.constant 7 : index
    %c0_36 = arith.constant 0 : index
    %43 = vector.load %arg1[%c0_35, %c7, %c0_36] : memref<2x24x16xf32, #tpu.memory_space<vmem>>, vector<2x1x16xf32>
    %c7_37 = arith.constant 7 : index
    %c0_38 = arith.constant 0 : index
    %c0_39 = arith.constant 0 : index
    %44 = vector.load %arg2[%c7_37, %c0_38, %c0_39] : memref<24x8x16xf32, #tpu.memory_space<vmem>>, vector<1x8x16xf32>
    %45 = vector.broadcast %43 : vector<2x1x16xf32> to vector<2x8x16xf32>
    %46 = vector.broadcast %44 : vector<1x8x16xf32> to vector<2x8x16xf32>
    %47 = arith.mulf %45, %46 : vector<2x8x16xf32>
    %48 = arith.addf %42, %47 : vector<2x8x16xf32>
    %c0_40 = arith.constant 0 : index
    %c8 = arith.constant 8 : index
    %c0_41 = arith.constant 0 : index
    %49 = vector.load %arg1[%c0_40, %c8, %c0_41] : memref<2x24x16xf32, #tpu.memory_space<vmem>>, vector<2x1x16xf32>
    %c8_42 = arith.constant 8 : index
    %c0_43 = arith.constant 0 : index
    %c0_44 = arith.constant 0 : index
    %50 = vector.load %arg2[%c8_42, %c0_43, %c0_44] : memref<24x8x16xf32, #tpu.memory_space<vmem>>, vector<1x8x16xf32>
    %51 = vector.broadcast %49 : vector<2x1x16xf32> to vector<2x8x16xf32>
    %52 = vector.broadcast %50 : vector<1x8x16xf32> to vector<2x8x16xf32>
    %53 = arith.mulf %51, %52 : vector<2x8x16xf32>
    %54 = arith.addf %48, %53 : vector<2x8x16xf32>
    %c0_45 = arith.constant 0 : index
    %c9 = arith.constant 9 : index
    %c0_46 = arith.constant 0 : index
    %55 = vector.load %arg1[%c0_45, %c9, %c0_46] : memref<2x24x16xf32, #tpu.memory_space<vmem>>, vector<2x1x16xf32>
    %c9_47 = arith.constant 9 : index
    %c0_48 = arith.constant 0 : index
    %c0_49 = arith.constant 0 : index
    %56 = vector.load %arg2[%c9_47, %c0_48, %c0_49] : memref<24x8x16xf32, #tpu.memory_space<vmem>>, vector<1x8x16xf32>
    %57 = vector.broadcast %55 : vector<2x1x16xf32> to vector<2x8x16xf32>
    %58 = vector.broadcast %56 : vector<1x8x16xf32> to vector<2x8x16xf32>
    %59 = arith.mulf %57, %58 : vector<2x8x16xf32>
    %60 = arith.addf %54, %59 : vector<2x8x16xf32>
    %c0_50 = arith.constant 0 : index
    %c10 = arith.constant 10 : index
    %c0_51 = arith.constant 0 : index
    %61 = vector.load %arg1[%c0_50, %c10, %c0_51] : memref<2x24x16xf32, #tpu.memory_space<vmem>>, vector<2x1x16xf32>
    %c10_52 = arith.constant 10 : index
    %c0_53 = arith.constant 0 : index
    %c0_54 = arith.constant 0 : index
    %62 = vector.load %arg2[%c10_52, %c0_53, %c0_54] : memref<24x8x16xf32, #tpu.memory_space<vmem>>, vector<1x8x16xf32>
    %63 = vector.broadcast %61 : vector<2x1x16xf32> to vector<2x8x16xf32>
    %64 = vector.broadcast %62 : vector<1x8x16xf32> to vector<2x8x16xf32>
    %65 = arith.mulf %63, %64 : vector<2x8x16xf32>
    %66 = arith.addf %60, %65 : vector<2x8x16xf32>
    %c0_55 = arith.constant 0 : index
    %c11 = arith.constant 11 : index
    %c0_56 = arith.constant 0 : index
    %67 = vector.load %arg1[%c0_55, %c11, %c0_56] : memref<2x24x16xf32, #tpu.memory_space<vmem>>, vector<2x1x16xf32>
    %c11_57 = arith.constant 11 : index
    %c0_58 = arith.constant 0 : index
    %c0_59 = arith.constant 0 : index
    %68 = vector.load %arg2[%c11_57, %c0_58, %c0_59] : memref<24x8x16xf32, #tpu.memory_space<vmem>>, vector<1x8x16xf32>
    %69 = vector.broadcast %67 : vector<2x1x16xf32> to vector<2x8x16xf32>
    %70 = vector.broadcast %68 : vector<1x8x16xf32> to vector<2x8x16xf32>
    %71 = arith.mulf %69, %70 : vector<2x8x16xf32>
    %72 = arith.addf %66, %71 : vector<2x8x16xf32>
    %c0_60 = arith.constant 0 : index
    %c12 = arith.constant 12 : index
    %c0_61 = arith.constant 0 : index
    %73 = vector.load %arg1[%c0_60, %c12, %c0_61] : memref<2x24x16xf32, #tpu.memory_space<vmem>>, vector<2x1x16xf32>
    %c12_62 = arith.constant 12 : index
    %c0_63 = arith.constant 0 : index
    %c0_64 = arith.constant 0 : index
    %74 = vector.load %arg2[%c12_62, %c0_63, %c0_64] : memref<24x8x16xf32, #tpu.memory_space<vmem>>, vector<1x8x16xf32>
    %75 = vector.broadcast %73 : vector<2x1x16xf32> to vector<2x8x16xf32>
    %76 = vector.broadcast %74 : vector<1x8x16xf32> to vector<2x8x16xf32>
    %77 = arith.mulf %75, %76 : vector<2x8x16xf32>
    %78 = arith.addf %72, %77 : vector<2x8x16xf32>
    %c0_65 = arith.constant 0 : index
    %c13 = arith.constant 13 : index
    %c0_66 = arith.constant 0 : index
    %79 = vector.load %arg1[%c0_65, %c13, %c0_66] : memref<2x24x16xf32, #tpu.memory_space<vmem>>, vector<2x1x16xf32>
    %c13_67 = arith.constant 13 : index
    %c0_68 = arith.constant 0 : index
    %c0_69 = arith.constant 0 : index
    %80 = vector.load %arg2[%c13_67, %c0_68, %c0_69] : memref<24x8x16xf32, #tpu.memory_space<vmem>>, vector<1x8x16xf32>
    %81 = vector.broadcast %79 : vector<2x1x16xf32> to vector<2x8x16xf32>
    %82 = vector.broadcast %80 : vector<1x8x16xf32> to vector<2x8x16xf32>
    %83 = arith.mulf %81, %82 : vector<2x8x16xf32>
    %84 = arith.addf %78, %83 : vector<2x8x16xf32>
    %c0_70 = arith.constant 0 : index
    %c14 = arith.constant 14 : index
    %c0_71 = arith.constant 0 : index
    %85 = vector.load %arg1[%c0_70, %c14, %c0_71] : memref<2x24x16xf32, #tpu.memory_space<vmem>>, vector<2x1x16xf32>
    %c14_72 = arith.constant 14 : index
    %c0_73 = arith.constant 0 : index
    %c0_74 = arith.constant 0 : index
    %86 = vector.load %arg2[%c14_72, %c0_73, %c0_74] : memref<24x8x16xf32, #tpu.memory_space<vmem>>, vector<1x8x16xf32>
    %87 = vector.broadcast %85 : vector<2x1x16xf32> to vector<2x8x16xf32>
    %88 = vector.broadcast %86 : vector<1x8x16xf32> to vector<2x8x16xf32>
    %89 = arith.mulf %87, %88 : vector<2x8x16xf32>
    %90 = arith.addf %84, %89 : vector<2x8x16xf32>
    %c0_75 = arith.constant 0 : index
    %c15 = arith.constant 15 : index
    %c0_76 = arith.constant 0 : index
    %91 = vector.load %arg1[%c0_75, %c15, %c0_76] : memref<2x24x16xf32, #tpu.memory_space<vmem>>, vector<2x1x16xf32>
    %c15_77 = arith.constant 15 : index
    %c0_78 = arith.constant 0 : index
    %c0_79 = arith.constant 0 : index
    %92 = vector.load %arg2[%c15_77, %c0_78, %c0_79] : memref<24x8x16xf32, #tpu.memory_space<vmem>>, vector<1x8x16xf32>
    %93 = vector.broadcast %91 : vector<2x1x16xf32> to vector<2x8x16xf32>
    %94 = vector.broadcast %92 : vector<1x8x16xf32> to vector<2x8x16xf32>
    %95 = arith.mulf %93, %94 : vector<2x8x16xf32>
    %96 = arith.addf %90, %95 : vector<2x8x16xf32>
    %c0_80 = arith.constant 0 : index
    %c16 = arith.constant 16 : index
    %c0_81 = arith.constant 0 : index
    %97 = vector.load %arg1[%c0_80, %c16, %c0_81] : memref<2x24x16xf32, #tpu.memory_space<vmem>>, vector<2x1x16xf32>
    %c16_82 = arith.constant 16 : index
    %c0_83 = arith.constant 0 : index
    %c0_84 = arith.constant 0 : index
    %98 = vector.load %arg2[%c16_82, %c0_83, %c0_84] : memref<24x8x16xf32, #tpu.memory_space<vmem>>, vector<1x8x16xf32>
    %99 = vector.broadcast %97 : vector<2x1x16xf32> to vector<2x8x16xf32>
    %100 = vector.broadcast %98 : vector<1x8x16xf32> to vector<2x8x16xf32>
    %101 = arith.mulf %99, %100 : vector<2x8x16xf32>
    %102 = arith.addf %96, %101 : vector<2x8x16xf32>
    %c0_85 = arith.constant 0 : index
    %c17 = arith.constant 17 : index
    %c0_86 = arith.constant 0 : index
    %103 = vector.load %arg1[%c0_85, %c17, %c0_86] : memref<2x24x16xf32, #tpu.memory_space<vmem>>, vector<2x1x16xf32>
    %c17_87 = arith.constant 17 : index
    %c0_88 = arith.constant 0 : index
    %c0_89 = arith.constant 0 : index
    %104 = vector.load %arg2[%c17_87, %c0_88, %c0_89] : memref<24x8x16xf32, #tpu.memory_space<vmem>>, vector<1x8x16xf32>
    %105 = vector.broadcast %103 : vector<2x1x16xf32> to vector<2x8x16xf32>
    %106 = vector.broadcast %104 : vector<1x8x16xf32> to vector<2x8x16xf32>
    %107 = arith.mulf %105, %106 : vector<2x8x16xf32>
    %108 = arith.addf %102, %107 : vector<2x8x16xf32>
    %c0_90 = arith.constant 0 : index
    %c18 = arith.constant 18 : index
    %c0_91 = arith.constant 0 : index
    %109 = vector.load %arg1[%c0_90, %c18, %c0_91] : memref<2x24x16xf32, #tpu.memory_space<vmem>>, vector<2x1x16xf32>
    %c18_92 = arith.constant 18 : index
    %c0_93 = arith.constant 0 : index
    %c0_94 = arith.constant 0 : index
    %110 = vector.load %arg2[%c18_92, %c0_93, %c0_94] : memref<24x8x16xf32, #tpu.memory_space<vmem>>, vector<1x8x16xf32>
    %111 = vector.broadcast %109 : vector<2x1x16xf32> to vector<2x8x16xf32>
    %112 = vector.broadcast %110 : vector<1x8x16xf32> to vector<2x8x16xf32>
    %113 = arith.mulf %111, %112 : vector<2x8x16xf32>
    %114 = arith.addf %108, %113 : vector<2x8x16xf32>
    %c0_95 = arith.constant 0 : index
    %c19 = arith.constant 19 : index
    %c0_96 = arith.constant 0 : index
    %115 = vector.load %arg1[%c0_95, %c19, %c0_96] : memref<2x24x16xf32, #tpu.memory_space<vmem>>, vector<2x1x16xf32>
    %c19_97 = arith.constant 19 : index
    %c0_98 = arith.constant 0 : index
    %c0_99 = arith.constant 0 : index
    %116 = vector.load %arg2[%c19_97, %c0_98, %c0_99] : memref<24x8x16xf32, #tpu.memory_space<vmem>>, vector<1x8x16xf32>
    %117 = vector.broadcast %115 : vector<2x1x16xf32> to vector<2x8x16xf32>
    %118 = vector.broadcast %116 : vector<1x8x16xf32> to vector<2x8x16xf32>
    %119 = arith.mulf %117, %118 : vector<2x8x16xf32>
    %120 = arith.addf %114, %119 : vector<2x8x16xf32>
    %c0_100 = arith.constant 0 : index
    %c20 = arith.constant 20 : index
    %c0_101 = arith.constant 0 : index
    %121 = vector.load %arg1[%c0_100, %c20, %c0_101] : memref<2x24x16xf32, #tpu.memory_space<vmem>>, vector<2x1x16xf32>
    %c20_102 = arith.constant 20 : index
    %c0_103 = arith.constant 0 : index
    %c0_104 = arith.constant 0 : index
    %122 = vector.load %arg2[%c20_102, %c0_103, %c0_104] : memref<24x8x16xf32, #tpu.memory_space<vmem>>, vector<1x8x16xf32>
    %123 = vector.broadcast %121 : vector<2x1x16xf32> to vector<2x8x16xf32>
    %124 = vector.broadcast %122 : vector<1x8x16xf32> to vector<2x8x16xf32>
    %125 = arith.mulf %123, %124 : vector<2x8x16xf32>
    %126 = arith.addf %120, %125 : vector<2x8x16xf32>
    %c0_105 = arith.constant 0 : index
    %c21 = arith.constant 21 : index
    %c0_106 = arith.constant 0 : index
    %127 = vector.load %arg1[%c0_105, %c21, %c0_106] : memref<2x24x16xf32, #tpu.memory_space<vmem>>, vector<2x1x16xf32>
    %c21_107 = arith.constant 21 : index
    %c0_108 = arith.constant 0 : index
    %c0_109 = arith.constant 0 : index
    %128 = vector.load %arg2[%c21_107, %c0_108, %c0_109] : memref<24x8x16xf32, #tpu.memory_space<vmem>>, vector<1x8x16xf32>
    %129 = vector.broadcast %127 : vector<2x1x16xf32> to vector<2x8x16xf32>
    %130 = vector.broadcast %128 : vector<1x8x16xf32> to vector<2x8x16xf32>
    %131 = arith.mulf %129, %130 : vector<2x8x16xf32>
    %132 = arith.addf %126, %131 : vector<2x8x16xf32>
    %c0_110 = arith.constant 0 : index
    %c22 = arith.constant 22 : index
    %c0_111 = arith.constant 0 : index
    %133 = vector.load %arg1[%c0_110, %c22, %c0_111] : memref<2x24x16xf32, #tpu.memory_space<vmem>>, vector<2x1x16xf32>
    %c22_112 = arith.constant 22 : index
    %c0_113 = arith.constant 0 : index
    %c0_114 = arith.constant 0 : index
    %134 = vector.load %arg2[%c22_112, %c0_113, %c0_114] : memref<24x8x16xf32, #tpu.memory_space<vmem>>, vector<1x8x16xf32>
    %135 = vector.broadcast %133 : vector<2x1x16xf32> to vector<2x8x16xf32>
    %136 = vector.broadcast %134 : vector<1x8x16xf32> to vector<2x8x16xf32>
    %137 = arith.mulf %135, %136 : vector<2x8x16xf32>
    %138 = arith.addf %132, %137 : vector<2x8x16xf32>
    %c0_115 = arith.constant 0 : index
    %c23 = arith.constant 23 : index
    %c0_116 = arith.constant 0 : index
    %139 = vector.load %arg1[%c0_115, %c23, %c0_116] : memref<2x24x16xf32, #tpu.memory_space<vmem>>, vector<2x1x16xf32>
    %c23_117 = arith.constant 23 : index
    %c0_118 = arith.constant 0 : index
    %c0_119 = arith.constant 0 : index
    %140 = vector.load %arg2[%c23_117, %c0_118, %c0_119] : memref<24x8x16xf32, #tpu.memory_space<vmem>>, vector<1x8x16xf32>
    %141 = vector.broadcast %139 : vector<2x1x16xf32> to vector<2x8x16xf32>
    %142 = vector.broadcast %140 : vector<1x8x16xf32> to vector<2x8x16xf32>
    %143 = arith.mulf %141, %142 : vector<2x8x16xf32>
    %144 = arith.addf %138, %143 : vector<2x8x16xf32>
    %c0_120 = arith.constant 0 : index
    %c0_121 = arith.constant 0 : index
    %145 = vector.load %arg3[%c0_120, %c0_121] : memref<8x16xf32, #tpu.memory_space<vmem>>, vector<8x16xf32>
    %146 = vector.shape_cast %145 : vector<8x16xf32> to vector<1x8x16xf32>
    %147 = vector.broadcast %146 : vector<1x8x16xf32> to vector<2x8x16xf32>
    %148 = arith.addf %144, %147 : vector<2x8x16xf32>
    %c0_122 = arith.constant 0 : index
    %c0_123 = arith.constant 0 : index
    %c0_124 = arith.constant 0 : index
    %149 = vector.load %arg4[%c0_122, %c0_123, %c0_124] : memref<2x8x16xf32, #tpu.memory_space<vmem>>, vector<2x8x16xf32>
    tpu.vector_store %arg4[%c0_122, %c0_123, %c0_124], %148 {strides = array<i32>} : memref<2x8x16xf32, #tpu.memory_space<vmem>>, vector<2x8x16xf32>,
    return
  }
  func.func @transform_0(%arg0: i32) -> (i32, i32, i32) {
    %c0_i32 = arith.constant 0 : i32
    %c0_i32_0 = arith.constant 0 : i32
    %c0_i32_1 = arith.constant 0 : i32
    return %c0_i32, %c0_i32_0, %arg0 : i32, i32, i32
  }
  func.func @transform_1(%arg0: i32) -> (i32, i32, i32) {
    %c0_i32 = arith.constant 0 : i32
    %c0_i32_0 = arith.constant 0 : i32
    %c0_i32_1 = arith.constant 0 : i32
    return %c0_i32, %c0_i32_0, %arg0 : i32, i32, i32
  }
  func.func @transform_2(%arg0: i32) -> (i32, i32) {
    %c0_i32 = arith.constant 0 : i32
    %c0_i32_0 = arith.constant 0 : i32
    return %c0_i32, %arg0 : i32, i32
  }
  func.func @transform_3(%arg0: i32) -> (i32, i32, i32) {
    %c0_i32 = arith.constant 0 : i32
    %c0_i32_0 = arith.constant 0 : i32
    %c0_i32_1 = arith.constant 0 : i32
    return %c0_i32, %c0_i32_0, %arg0 : i32, i32, i32
  }
}

</mosaic_0001>

<bundles_post_ra>
// kernel: tpu_custom_call.1
= control target key start
LH: loop header
LB: loop body
LE: loop exit
PB: predicated region body
PF: predicated region fallthrough
CT: control target
= control target key end

     0   :  { %s791_s0 = inlined_call_operand.vmem [shape: f32[2,24,16], index: 0, kind: input, shape index: {}]   ;;  %s792_s1 = inlined_call_operand.vmem [shape: f32[24,8,16], index: 1, kind: input, shape index: {}]   ;;  %s793_s2 = inlined_call_operand.vmem [shape: f32[8,16], index: 2, kind: input, shape index: {}]   ;;  %s794_s3 = inlined_call_operand.hbm [shape: f32[2,8,16], index: 3, kind: output, shape index: {}]  }
   0x1   :  { %v420_v0 = vld [vmem:[%s791_s0] ss:$0 sm:$0xff]  ;;  %v423_v2 = vld [vmem:[%s791_s0 + $0x1] ss:$0 sm:$0xff]  ;;  %v422_v4 = vld [vmem:[%s792_s1 + $0x8] sm:$0xff] }
   0x2   :  { %v17_v1 = vld [vmem:[%s792_s1] sm:$0xff]  ;;  %v425_v6 = vld [vmem:[%s792_s1 + $0x10] sm:$0xff]  ;;  %v42_v7 = vmul.f32 %v423_v2, %v422_v4  ;;  %v428_v10 = vld [vmem:[%s792_s1 + $0x18] sm:$0xff] }
   0x3   :  { %v26_v3 = vmul.f32 %v420_v0, %v17_v1  ;;  %v426_v5 = vld [vmem:[%s791_s0 + $0x2] ss:$0 sm:$0xff]  ;;  %v429_v9 = vld [vmem:[%s791_s0 + $0x3] ss:$0 sm:$0xff]  ;;  %v432_v11 = vld [vmem:[%s791_s0 + $0x4] ss:$0 sm:$0xff] }
   0x4   :  { %v58_v8 = vmul.f32 %v426_v5, %v425_v6  ;;  %v431_v12 = vld [vmem:[%s792_s1 + $0x20] sm:$0xff]  ;;  %v74_v14 = vmul.f32 %v429_v9, %v428_v10  ;;  %v434_v16 = vld [vmem:[%s792_s1 + $0x28] sm:$0xff]  ;;  %v437_v20 = vld [vmem:[%s792_s1 + $0x30] sm:$0xff] }
   0x5   :  { %v44_v13 = vadd.f32 %v42_v7, %v26_v3  ;;  %v435_v15 = vld [vmem:[%s791_s0 + $0x5] ss:$0 sm:$0xff]  ;;  %v90_v18 = vmul.f32 %v432_v11, %v431_v12  ;;  %v438_v19 = vld [vmem:[%s791_s0 + $0x6] ss:$0 sm:$0xff]  ;;  %v441_v23 = vld [vmem:[%s791_s0 + $0x7] ss:$0 sm:$0xff] }
   0x6   :  { %v106_v22 = vmul.f32 %v435_v15, %v434_v16  ;;  %v440_v24 = vld [vmem:[%s792_s1 + $0x38] sm:$0xff]  ;;  %v122_v26 = vmul.f32 %v438_v19, %v437_v20  ;;  %v444_v27 = vld [vmem:[%s791_s0 + $0x8] ss:$0 sm:$0xff]  ;;  %v443_v28 = vld [vmem:[%s792_s1 + $0x40] sm:$0xff] }
   0x7   :  { %v60_v17 = vadd.f32 %v58_v8, %v44_v13  ;;  %v138_v30 = vmul.f32 %v441_v23, %v440_v24  ;;  %v447_v31 = vld [vmem:[%s791_s0 + $0x9] ss:$0 sm:$0xff]  ;;  %v154_v34 = vmul.f32 %v444_v27, %v443_v28  ;;  %v450_v35 = vld [vmem:[%s791_s0 + $0xa] ss:$0 sm:$0xff]  ;;  %v607_v36 = vld [vmem:[%s792_s1 + $0x50] sm:$0xff] }
   0x8   :  { %v599_v32 = vld [vmem:[%s792_s1 + $0x48] sm:$0xff]  ;;  %v421_v40 = vld [vmem:[%s791_s0 + $0x18] ss:$0 sm:$0xff]  ;;  %v424_v41 = vld [vmem:[%s791_s0 + $0x19] ss:$0 sm:$0xff]  ;;  %v186_v48 = vmul.f32 %v450_v35, %v607_v36 }
   0x9   :  { %v76_v21 = vadd.f32 %v74_v14, %v60_v17  ;;  %v170_v38 = vmul.f32 %v447_v31, %v599_v32  ;;  %v453_v39 = vld [vmem:[%s791_s0 + $0xb] ss:$0 sm:$0xff]  ;;  %v622_v42 = vld [vmem:[%s792_s1 + $0x58] sm:$0xff]  ;;  %v27_v43 = vmul.f32 %v421_v40, %v17_v1  ;;  %v43_v44 = vmul.f32 %v424_v41, %v422_v4  ;;  %v456_v51 = vld [vmem:[%s791_s0 + $0xc] ss:$0 sm:$0xff] }
   0xa   :  { %v427_v45 = vld [vmem:[%s791_s0 + $0x1a] ss:$0 sm:$0xff]  ;;  %v430_v46 = vld [vmem:[%s791_s0 + $0x1b] ss:$0 sm:$0xff]  ;;  %v433_v50 = vld [vmem:[%s791_s0 + $0x1c] ss:$0 sm:$0xff]  ;;  %v202_v56 = vmul.f32 %v453_v39, %v622_v42 }
   0xb   :  { %v92_v25 = vadd.f32 %v90_v18, %v76_v21  ;;  %v59_v49 = vmul.f32 %v427_v45, %v425_v6  ;;  %v640_v52 = vld [vmem:[%s792_s1 + $0x60] sm:$0xff]  ;;  %v45_v53 = vadd.f32 %v43_v44, %v27_v43  ;;  %v75_v54 = vmul.f32 %v430_v46, %v428_v10  ;;  %v436_v57 = vld [vmem:[%s791_s0 + $0x1d] ss:$0 sm:$0xff]  ;;  %v459_v58 = vld [vmem:[%s791_s0 + $0xd] ss:$0 sm:$0xff] }
   0xc   :  { %v652_v59 = vld [vmem:[%s792_s1 + $0x68] sm:$0xff]  ;;  %v91_v61 = vmul.f32 %v433_v50, %v431_v12  ;;  %v218_v63 = vmul.f32 %v456_v51, %v640_v52  ;;  %v439_v0 = vld [vmem:[%s791_s0 + $0x1e] ss:$0 sm:$0xff]  ;;  %v664_v2 = vld [vmem:[%s792_s1 + $0x70] sm:$0xff]  ;;  %v107_v4 = vmul.f32 %v436_v57, %v434_v16 }
   0xd   :  { %v108_v29 = vadd.f32 %v106_v22, %v92_v25  ;;  %v61_v60 = vadd.f32 %v59_v49, %v45_v53  ;;  %v462_v1 = vld [vmem:[%s791_s0 + $0xe] ss:$0 sm:$0xff]  ;;  %v234_v6 = vmul.f32 %v459_v58, %v652_v59  ;;  %v442_v7 = vld [vmem:[%s791_s0 + $0x1f] ss:$0 sm:$0xff] }
   0xf   :  { %v124_v33 = vadd.f32 %v122_v26, %v108_v29  ;;  %v77_v3 = vadd.f32 %v75_v54, %v61_v60 }
  0x11   :  { %v140_v37 = vadd.f32 %v138_v30, %v124_v33 }
  0x13   :  { %v156_v47 = vadd.f32 %v154_v34, %v140_v37 }
  0x15   :  { %v172_v55 = vadd.f32 %v170_v38, %v156_v47 }
  0x17   :  { %v188_v62 = vadd.f32 %v186_v48, %v172_v55 }
  0x19   :  { %v204_v5 = vadd.f32 %v202_v56, %v188_v62 }
  0x1a   :  { %8 = vsyncpa [#allocation3], 0  ;;  %v465_v8 = vld [vmem:[%s791_s0 + $0xf] ss:$0 sm:$0xff]  ;;  %v676_v9 = vld [vmem:[%s792_s1 + $0x78] sm:$0xff]  ;;  %v93_v10 = vadd.f32 %v91_v61, %v77_v3  ;;  %v123_v11 = vmul.f32 %v439_v0, %v437_v20  ;;  %v250_v13 = vmul.f32 %v462_v1, %v664_v2  ;;  %v139_v18 = vmul.f32 %v442_v7, %v440_v24  ;;  %s516_s21 = smov [#allocation2]  }
  0x1b   :  { %v220_v12 = vadd.f32 %v218_v63, %v204_v5  ;;  %v445_v14 = vld [vmem:[%s791_s0 + $0x20] ss:$0 sm:$0xff]  ;;  %v468_v15 = vld [vmem:[%s791_s0 + $0x10] ss:$0 sm:$0xff]  ;;  %v266_v20 = vmul.f32 %v465_v8, %v676_v9  ;;  %v448_v21 = vld [vmem:[%s791_s0 + $0x21] ss:$0 sm:$0xff] }
  0x1c   :  { %v467_v16 = vld [vmem:[%s792_s1 + $0x80] sm:$0xff]  ;;  %v109_v17 = vadd.f32 %v107_v4, %v93_v10  ;;  %v471_v22 = vld [vmem:[%s791_s0 + $0x11] ss:$0 sm:$0xff]  ;;  %v470_v23 = vld [vmem:[%s792_s1 + $0x88] sm:$0xff]  ;;  %v155_v26 = vmul.f32 %v445_v14, %v443_v28  ;;  %v171_v34 = vmul.f32 %v448_v21, %v599_v32  ;;  %vm401_vm0 = vcmask 130048   ;;  %s409_s22 = sshll.u32 %s516_s21, 4  ;;  %s410_s22 = int_to_ptr.vmem [resolvable:$true] %s409_s22 }
  0x1d   :  { %v236_v19 = vadd.f32 %v234_v6, %v220_v12  ;;  %v282_v29 = vmul.f32 %v468_v15, %v467_v16  ;;  %v451_v24 = vld [vmem:[%s791_s0 + $0x22] ss:$0 sm:$0xff]  ;;  %v474_v30 = vld [vmem:[%s791_s0 + $0x12] ss:$0 sm:$0xff]  ;;  %v298_v37 = vmul.f32 %v471_v22, %v470_v23  ;;  %v454_v28 = vld [vmem:[%s791_s0 + $0x23] ss:$0 sm:$0xff]  ;;  %p499_p1 = scmp.lt.s32.totalorder %s410_s22, %s410_s22 }
  0x1e   :  { %v125_v25 = vadd.f32 %v123_v11, %v109_v17  ;;  %v473_v31 = vld [vmem:[%s792_s1 + $0x90] sm:$0xff]  ;;  %v476_v39 = vld [vmem:[%s792_s1 + $0x98] sm:$0xff]  ;;  %v187_v41 = vmul.f32 %v451_v24, %v607_v36  ;;  %v457_v32 = vld [vmem:[%s791_s0 + $0x24] ss:$0 sm:$0xff]  ;;  %v203_v48 = vmul.f32 %v454_v28, %v622_v42  ;;  %s494_s23 = scalar_lea.vmem %s410_s22, 256 }
  0x1f   :  { %v252_v27 = vadd.f32 %v250_v13, %v236_v19  ;;  %v477_v38 = vld [vmem:[%s791_s0 + $0x13] ss:$0 sm:$0xff]  ;;  %v314_v44 = vmul.f32 %v474_v30, %v473_v31  ;;  %v480_v45 = vld [vmem:[%s791_s0 + $0x14] ss:$0 sm:$0xff]  ;;  %v479_v46 = vld [vmem:[%s792_s1 + $0xa0] sm:$0xff]  ;;  %v219_v55 = vmul.f32 %v457_v32, %v640_v52  ;;  %p495_p0 = scmp.ne.s32.totalorder %s410_s22, %s494_s23  ;;  %p500_p2 = scmp.lt.s32.totalorder %s494_s23, %s494_s23 }
  0x20   :  { %v141_v33 = vadd.f32 %v139_v18, %v125_v25  ;;  %v330_v50 = vmul.f32 %v477_v38, %v476_v39  ;;  %v460_v36 = vld [vmem:[%s791_s0 + $0x25] ss:$0 sm:$0xff]  ;;  %v483_v51 = vld [vmem:[%s791_s0 + $0x15] ss:$0 sm:$0xff]  ;;  %v482_v53 = vld [vmem:[%s792_s1 + $0xa8] sm:$0xff]  ;;  %v346_v57 = vmul.f32 %v480_v45, %v479_v46 }
  0x21   :  { %v268_v35 = vadd.f32 %v266_v20, %v252_v27  ;;  %v463_v42 = vld [vmem:[%s791_s0 + $0x26] ss:$0 sm:$0xff]  ;;  %v486_v58 = vld [vmem:[%s791_s0 + $0x16] ss:$0 sm:$0xff]  ;;  %v235_v62 = vmul.f32 %v460_v36, %v652_v59  ;;  %v362_v0 = vmul.f32 %v483_v51, %v482_v53  ;;  %v466_v52 = vld [vmem:[%s791_s0 + $0x27] ss:$0 sm:$0xff]  ;;  %p501_p3 = por %p500_p2, %p499_p1 }
  0x22   :  { %v157_v40 = vadd.f32 %v155_v26, %v141_v33  ;;  %v485_v60 = vld [vmem:[%s792_s1 + $0xb0] sm:$0xff]  ;;  %v488_v3 = vld [vmem:[%s792_s1 + $0xb8] sm:$0xff]  ;;  %v251_v5 = vmul.f32 %v463_v42, %v664_v2  ;;  %v469_v59 = vld [vmem:[%s791_s0 + $0x28] ss:$0 sm:$0xff]  ;;  %v267_v10 = vmul.f32 %v466_v52, %v676_v9 }
  0x23   :  { %v284_v43 = vadd.f32 %v282_v29, %v268_v35  ;;  %v489_v1 = vld [vmem:[%s791_s0 + $0x17] ss:$0 sm:$0xff]  ;;  %v378_v7 = vmul.f32 %v486_v58, %v485_v60  ;;  %v472_v13 = vld [vmem:[%s791_s0 + $0x29] ss:$0 sm:$0xff]  ;;  %v283_v15 = vmul.f32 %v469_v59, %v467_v16  ;;  %v475_v2 = vld [vmem:[%s791_s0 + $0x2a] ss:$0 sm:$0xff]  ;;  %p502_p4 = pnand %p501_p3, %p495_p0 }
  0x24   :  { %v173_v47 = vadd.f32 %v171_v34, %v157_v40  ;;  %v394_v12 = vmul.f32 %v489_v1, %v488_v3  ;;  %v398_v18 = vld [vmem:[%s793_s2] sm:$0xff]  ;;  %v299_v20 = vmul.f32 %v472_v13, %v470_v23  ;;  %v478_v21 = vld [vmem:[%s791_s0 + $0x2b] ss:$0 sm:$0xff]  ;;  %v315_v25 = vmul.f32 %v475_v2, %v473_v31  ;;  %v481_v26 = vld [vmem:[%s791_s0 + $0x2c] ss:$0 sm:$0xff] }
  0x25   :  { %v300_v49 = vadd.f32 %v298_v37, %v284_v43  ;;  %v331_v29 = vmul.f32 %v478_v21, %v476_v39  ;;  %v484_v23 = vld [vmem:[%s791_s0 + $0x2d] ss:$0 sm:$0xff]  ;;  %v347_v30 = vmul.f32 %v481_v26, %v479_v46  ;;  %v487_v33 = vld [vmem:[%s791_s0 + $0x2e] ss:$0 sm:$0xff]  ;;  %v490_v35 = vld [vmem:[%s791_s0 + $0x2f] ss:$0 sm:$0xff] }
  0x26   :  { %v189_v54 = vadd.f32 %v187_v41, %v173_v47  ;;  %v363_v34 = vmul.f32 %v484_v23, %v482_v53  ;;  %v379_v28 = vmul.f32 %v487_v33, %v485_v60  ;;  %v395_v39 = vmul.f32 %v490_v35, %v488_v3 }
  0x27   :  { %v316_v56 = vadd.f32 %v314_v44, %v300_v49 }
  0x28   :  { %v205_v61 = vadd.f32 %v203_v48, %v189_v54 }
  0x29   :  { %v332_v63 = vadd.f32 %v330_v50, %v316_v56 }
  0x2a   :  { %v221_v4 = vadd.f32 %v219_v55, %v205_v61 }
  0x2b   :  { %v348_v6 = vadd.f32 %v346_v57, %v332_v63 }
  0x2c   :  { %v237_v8 = vadd.f32 %v235_v62, %v221_v4 }
  0x2d   :  { %v364_v11 = vadd.f32 %v362_v0, %v348_v6 }
  0x2e   :  { %v253_v14 = vadd.f32 %v251_v5, %v237_v8 }
  0x2f   :  { %v380_v17 = vadd.f32 %v378_v7, %v364_v11 }
  0x30   :  { %v269_v19 = vadd.f32 %v267_v10, %v253_v14 }
  0x31   :  { %v396_v9 = vadd.f32 %v394_v12, %v380_v17 }
  0x32   :  { %v285_v22 = vadd.f32 %v283_v15, %v269_v19 }
  0x33   :  { %v399_v16 = vadd.f32 %v398_v18, %v396_v9 }
  0x34   :  { %v301_v27 = vadd.f32 %v299_v20, %v285_v22 }
  0x35   :  { %402 = vst.msk [vmem:[#allocation2] sm:$0xff] %vm401_vm0, %v399_v16 }
  0x36   :  { %v317_v24 = vadd.f32 %v315_v25, %v301_v27 }
  0x38   :  { %v333_v31 = vadd.f32 %v331_v29, %v317_v24 }
  0x3a   :  { %v349_v37 = vadd.f32 %v347_v30, %v333_v31 }
  0x3c   :  { %v365_v38 = vadd.f32 %v363_v34, %v349_v37 }
  0x3e   :  { %v381_v40 = vadd.f32 %v379_v28, %v365_v38 }
  0x40   :  { %v397_v41 = vadd.f32 %v395_v39, %v381_v40 }
  0x42   :  { %v400_v43 = vadd.f32 %v398_v18, %v397_v41 }
  0x44   :  { %403 = vst.msk [vmem:[#allocation2 + $0x8] sm:$0xff] %vm401_vm0, %v400_v43 }
  0x45   :  { %505 = shalt.err (!%p502_p4)
}
  0x46   :  { %s517_s0 = smov 128   ;;  %s518_s24 = smov 8  }
  0x47   :  { %415 = dma.vmem_to_hbm [thread:$0]  %s410_s22, 256, %s794_s3, [#allocation3], %s517_s0, %s517_s0, %s518_s24  }
  0x48   :  { %514 = dma.done.wait [#allocation3], 256  }
  0x49   :  { %515 = vsyncadd [#allocation3], 4294967040 }
  0x4a   :  { %419 = vsyncpa [#allocation3], 1 }

</bundles_post_ra>
